<compile_context>
chip_gen: v7x
topology: tpu7x:2x2x1
jax: 0.10.0
libtpu: 0.0.40
codegen_flags: <defaults>
</compile_context>

<pallas_src>
import jax
import jax.numpy as jnp
from jax.experimental import pallas as pl
from jax.experimental.pallas import tpu as pltpu


_NEG_LARGE = -1e30  # bias for padded classes: exp underflows to exactly 0


def _round_up(x, m):
    return ((x + m - 1) // m) * m


def logreg_kernel(x_ref, w_ref, b_ref, o_ref, acc_ref):
    k = pl.program_id(1)

    @pl.when(k == 0)
    def _init():
        acc_ref[...] = jnp.zeros_like(acc_ref)

    # Partial X @ W for this K tile: MXU matmul with f32 accumulation.
    acc_ref[...] += jnp.dot(
        x_ref[...], w_ref[...], preferred_element_type=jnp.float32
    )

    @pl.when(k == pl.num_programs(1) - 1)
    def _epilogue():
        logits = acc_ref[...] + b_ref[...]
        # Numerically-stable softmax over the class (lane) axis, all in f32.
        # Padded classes carry a -1e30 bias, so exp == 0 and they contribute
        # nothing to the denominator.
        m = jnp.max(logits, axis=-1, keepdims=True)
        e = jnp.exp(logits - m)
        denom = jnp.sum(e, axis=-1, keepdims=True)
        o_ref[...] = (e / denom).astype(o_ref.dtype)


def pt_logreg_forward(x, w, b, *, tm=512, tk=512, out_dtype=jnp.float32):
    """Forward pass of PTLogreg: softmax(X @ W + b, axis=1)."""
    N, D = x.shape
    Dw, C = w.shape
    assert D == Dw and b.shape == (C,)

    # Module spec: X is cast to float32 before the matmul.
    x = x.astype(jnp.float32)
    w = w.astype(jnp.float32)
    b = b.astype(jnp.float32)

    # --- lane-dense class dimension: pad C up to a multiple of 128 ----------
    C_pad = _round_up(max(C, 1), 128)
    if C_pad != C:
        w = jnp.pad(w, ((0, 0), (0, C_pad - C)))          # zero columns
        b = jnp.concatenate(
            [b, jnp.full((C_pad - C,), _NEG_LARGE, dtype=jnp.float32)])
    b2 = b.reshape(1, C_pad)

    # --- K (feature) tiling: stream X / W tiles, cap VMEM independent of D --
    if D <= tk:
        tk_eff, D_pad = D, D                               # single K step
    else:
        tk_eff = max(128, (tk // 128) * 128)               # lane/MXU aligned
        D_pad = _round_up(D, tk_eff)
        if D_pad != D:                                     # zero-pad: 0*0 adds 0
            x = jnp.pad(x, ((0, 0), (0, D_pad - D)))
            w = jnp.pad(w, ((0, D_pad - D), (0, 0)))
    grid_k = D_pad // tk_eff

    # --- row tile: MXU-aligned (multiple of 256) when large -----------------
    tm_eff = min(tm, _round_up(N, 8))
    if tm_eff >= 256:
        tm_eff = (tm_eff // 256) * 256
    grid_m = pl.cdiv(N, tm_eff)

    # --- VMEM budget, clamped to physical capacity (v7x-safe) ---------------
    xb = jnp.dtype(x.dtype).itemsize
    wb = jnp.dtype(w.dtype).itemsize
    need = (2 * tm_eff * tk_eff * xb          # X tiles, double-buffered
            + 2 * tk_eff * C_pad * wb         # W tiles, double-buffered
            + 2 * C_pad * 4                   # bias, double-buffered (tiny)
            + 2 * tm_eff * C_pad * 4          # output tiles, double-buffered
            + tm_eff * C_pad * 4              # f32 accumulator scratch
            + 3 * tm_eff * C_pad * 4)         # logits / exp intermediates
    try:
        phys_vmem = int(pltpu.get_tpu_info().vmem_capacity_bytes)
    except Exception:
        phys_vmem = 64 << 20                  # v7x-safe fallback
    cap = (phys_vmem * 3) // 4
    vmem_limit = int(min(max((need * 3) // 2, 8 << 20), cap))

    cost = pl.CostEstimate(
        flops=2 * N * D_pad * C_pad,
        transcendentals=N * C_pad,
        bytes_accessed=(N * D_pad * xb + D_pad * C_pad * wb + C_pad * 4
                        + N * C_pad * jnp.dtype(out_dtype).itemsize),
    )

    out = pl.pallas_call(
        logreg_kernel,
        out_shape=jax.ShapeDtypeStruct((N, C_pad), out_dtype),
        grid_spec=pltpu.PrefetchScalarGridSpec(
            num_scalar_prefetch=0,
            grid=(grid_m, grid_k),
            in_specs=[
                pl.BlockSpec((tm_eff, tk_eff), lambda i, k: (i, k)),   # X tile
                pl.BlockSpec((tk_eff, C_pad), lambda i, k: (k, 0)),    # W tile
                pl.BlockSpec((1, C_pad), lambda i, k: (0, 0)),         # bias
            ],
            out_specs=pl.BlockSpec((tm_eff, C_pad), lambda i, k: (i, 0)),
            scratch_shapes=[pltpu.VMEM((tm_eff, C_pad), jnp.float32)],
        ),
        compiler_params=pltpu.CompilerParams(
            dimension_semantics=("parallel", "arbitrary"),
            vmem_limit_bytes=vmem_limit,
        ),
        cost_estimate=cost,
    )(x, w, b2)

    # Drop the padded classes (their probability is exactly 0 anyway).
    # TODO(synk): for C that is already a multiple of 128 this slice is a
    # no-op; for very small C a masked unpadded out_spec would avoid one
    # extra HBM pass.
    return out[:, :C]


if __name__ == "__main__":
    # Small shapes consistent with the module: D features, C classes, N rows.
    N, D, C = 64, 32, 10

    key = jax.random.PRNGKey(0)
    kx, kw, kb = jax.random.split(key, 3)

    # Deterministic "randn" parameter init (matches torch.randn(D, C) / (C,)).
    W = jax.random.normal(kw, (D, C), dtype=jnp.float32)
    b = jax.random.normal(kb, (C,), dtype=jnp.float32)
    X = jax.random.normal(kx, (N, D), dtype=jnp.float32)

    probs = jax.block_until_ready(pt_logreg_forward(X, W, b))

    # Reference check against plain JAX.
    ref = jax.nn.softmax(X @ W + b[None, :], axis=1)
    assert probs.shape == (N, C)
    assert jnp.allclose(probs, ref, atol=1e-3, rtol=1e-3), \
        float(jnp.max(jnp.abs(probs - ref)))
    assert jnp.allclose(jnp.sum(probs, axis=1), 1.0, atol=1e-3)

    print("KERNEL_OK")
</pallas_src>

<mosaic_0001>
module attributes {stable_mosaic.version = 11 : i64} {
  func.func @logreg_kernel(%arg0: i32, %arg1: i32, %arg2: memref<64x32xf32, #tpu.memory_space<vmem>>, %arg3: memref<32x128xf32, #tpu.memory_space<vmem>>, %arg4: memref<1x128xf32, #tpu.memory_space<vmem>>, %arg5: memref<64x128xf32, #tpu.memory_space<vmem>>, %arg6: memref<64x128xf32, #tpu.memory_space<vmem>>) attributes {dimension_semantics = [#tpu.dimension_semantics<parallel>, #tpu.dimension_semantics<arbitrary>], iteration_bounds = array<i64: 1, 1>, scalar_prefetch = 0 : i64, scratch_operands = 1 : i64, tpu.core_type = #tpu.core_type<tc>, window_params = [{transform_indices = @transform_0, window_bounds = array<i64: 64, 32>}, {transform_indices = @transform_1, window_bounds = array<i64: 32, 128>}, {pipeline_mode = #tpu.pipeline_mode<synchronous>, transform_indices = @transform_2, window_bounds = array<i64: 1, 128>}, {transform_indices = @transform_3, window_bounds = array<i64: 64, 128>}]} {
    %c0_i32 = arith.constant 0 : i32
    %0 = arith.cmpi eq, %arg1, %c0_i32 : i32
    %1 = arith.extui %0 : i1 to i32
    %c0_i32_0 = arith.constant 0 : i32
    %2 = arith.cmpi ne, %1, %c0_i32_0 : i32
    scf.if %2 {
      %cst_10 = arith.constant 0.000000e+00 : f32
      %12 = vector.broadcast %cst_10 : f32 to vector<64x128xf32>
      %c0_11 = arith.constant 0 : index
      %c0_12 = arith.constant 0 : index
      %13 = vector.load %arg6[%c0_11, %c0_12] : memref<64x128xf32, #tpu.memory_space<vmem>>, vector<64x128xf32>
      tpu.vector_store %arg6[%c0_11, %c0_12], %12 {strides = array<i32>} : memref<64x128xf32, #tpu.memory_space<vmem>>, vector<64x128xf32>,
    } else {
    }
    %c0 = arith.constant 0 : index
    %c0_1 = arith.constant 0 : index
    %3 = vector.load %arg6[%c0, %c0_1] : memref<64x128xf32, #tpu.memory_space<vmem>>, vector<64x128xf32>
    %c0_2 = arith.constant 0 : index
    %c0_3 = arith.constant 0 : index
    %4 = vector.load %arg2[%c0_2, %c0_3] : memref<64x32xf32, #tpu.memory_space<vmem>>, vector<64x32xf32>
    %c0_4 = arith.constant 0 : index
    %c0_5 = arith.constant 0 : index
    %5 = vector.load %arg3[%c0_4, %c0_5] : memref<32x128xf32, #tpu.memory_space<vmem>>, vector<32x128xf32>
    %cst = arith.constant dense<0.000000e+00> : vector<64x128xf32>
    %6 = tpu.matmul %4, %5, %cst {dimension_numbers = #tpu.dot_dimension_numbers<[1], [0], [0], [1], [0, 0, 1, 1], [], []>} : vector<64x32xf32>, vector<32x128xf32>, vector<64x128xf32> -> vector<64x128xf32>
    %7 = arith.addf %3, %6 : vector<64x128xf32>
    %c0_6 = arith.constant 0 : index
    %c0_7 = arith.constant 0 : index
    %8 = vector.load %arg6[%c0_6, %c0_7] : memref<64x128xf32, #tpu.memory_space<vmem>>, vector<64x128xf32>
    tpu.vector_store %arg6[%c0_6, %c0_7], %7 {strides = array<i32>} : memref<64x128xf32, #tpu.memory_space<vmem>>, vector<64x128xf32>,
    %c0_i32_8 = arith.constant 0 : i32
    %9 = arith.cmpi eq, %arg1, %c0_i32_8 : i32
    %10 = arith.extui %9 : i1 to i32
    %c0_i32_9 = arith.constant 0 : i32
    %11 = arith.cmpi ne, %10, %c0_i32_9 : i32
    scf.if %11 {
      %c0_10 = arith.constant 0 : index
      %c0_11 = arith.constant 0 : index
      %12 = vector.load %arg6[%c0_10, %c0_11] : memref<64x128xf32, #tpu.memory_space<vmem>>, vector<64x128xf32>
      %c0_12 = arith.constant 0 : index
      %c0_13 = arith.constant 0 : index
      %13 = vector.load %arg4[%c0_12, %c0_13] : memref<1x128xf32, #tpu.memory_space<vmem>>, vector<1x128xf32>
      %14 = vector.broadcast %13 : vector<1x128xf32> to vector<64x128xf32>
      %15 = arith.addf %12, %14 : vector<64x128xf32>
      %cst_14 = arith.constant dense<0xFF800000> : vector<64xf32>
      %16 = vector.multi_reduction <maximumf>, %15, %cst_14 [1] : vector<64x128xf32> to vector<64xf32>
      %17 = vector.shape_cast %16 : vector<64xf32> to vector<64x1xf32>
      %18 = vector.broadcast %17 : vector<64x1xf32> to vector<64x128xf32>
      %19 = arith.subf %15, %18 : vector<64x128xf32>
      %20 = math.exp %19 : vector<64x128xf32>
      %cst_15 = arith.constant dense<0.000000e+00> : vector<64xf32>
      %21 = vector.multi_reduction <add>, %20, %cst_15 [1] : vector<64x128xf32> to vector<64xf32>
      %22 = vector.shape_cast %21 : vector<64xf32> to vector<64x1xf32>
      %23 = vector.broadcast %22 : vector<64x1xf32> to vector<64x128xf32>
      %24 = arith.divf %20, %23 : vector<64x128xf32>
      %c0_16 = arith.constant 0 : index
      %c0_17 = arith.constant 0 : index
      %25 = vector.load %arg5[%c0_16, %c0_17] : memref<64x128xf32, #tpu.memory_space<vmem>>, vector<64x128xf32>
      tpu.vector_store %arg5[%c0_16, %c0_17], %24 {strides = array<i32>} : memref<64x128xf32, #tpu.memory_space<vmem>>, vector<64x128xf32>,
    } else {
    }
    return
  }
  func.func @transform_0(%arg0: i32, %arg1: i32) -> (i32, i32) {
    %c0_i32 = arith.constant 0 : i32
    return %arg0, %arg1 : i32, i32
  }
  func.func @transform_1(%arg0: i32, %arg1: i32) -> (i32, i32) {
    %c0_i32 = arith.constant 0 : i32
    %c0_i32_0 = arith.constant 0 : i32
    return %arg1, %c0_i32 : i32, i32
  }
  func.func @transform_2(%arg0: i32, %arg1: i32) -> (i32, i32) {
    %c0_i32 = arith.constant 0 : i32
    %c0_i32_0 = arith.constant 0 : i32
    %c0_i32_1 = arith.constant 0 : i32
    return %c0_i32, %c0_i32_0 : i32, i32
  }
  func.func @transform_3(%arg0: i32, %arg1: i32) -> (i32, i32) {
    %c0_i32 = arith.constant 0 : i32
    %c0_i32_0 = arith.constant 0 : i32
    return %arg0, %c0_i32 : i32, i32
  }
}

</mosaic_0001>

<bundles_post_ra>
// kernel: tpu_custom_call.1
= control target key start
LH: loop header
LB: loop body
LE: loop exit
PB: predicated region body
PF: predicated region fallthrough
CT: control target
= control target key end

     0   :  { %vm47_vm0 = vcmask 261120   ;;  %s509_s0 = inlined_call_operand.vmem [shape: f32[64,32], index: 0, kind: input, shape index: {}]   ;;  %s510_s1 = inlined_call_operand.vmem [shape: f32[32,128], index: 1, kind: input, shape index: {}]   ;;  %s511_s2 = inlined_call_operand.vmem [shape: f32[1,128], index: 2, kind: input, shape index: {}]   ;;  %s512_s3 = inlined_call_operand.hbm [shape: f32[64,128], index: 3, kind: output, shape index: {}]  }
   0x1   :  { %v43_v0 = vld [vmem:[%s510_s1] sm:$0xff]  ;;  %v44_v1 = vld [vmem:[%s510_s1 + $0x8] sm:$0xff]  ;;  %v45_v2 = vld [vmem:[%s510_s1 + $0x10] sm:$0xff] }
   0x2   :  { %v356_v3 = vpack.c.bf16 %v44_v1, %v43_v0  ;;  %v46_v4 = vld [vmem:[%s510_s1 + $0x18] sm:$0xff]  ;;  %v35_v5 = vld [vmem:[%s509_s0] sm:$0xff] }
   0x3   :  { %v39_v6 = vld [vmem:[%s509_s0 + $0x20] sm:$0xff]  ;;  %v360_v7 = vpack.c.bf16 %v46_v4, %v45_v2  ;;  %344 = vmatprep.mubr.msk.f32.mxu0 %vm47_vm0, %v35_v5 }
   0x4   :  { %350 = vmatprep.mubr.msk.f32.mxu1 %vm47_vm0, %v39_v6  ;;  %357 = vmatprep.subr.bf16.mxu0 %v356_v3 }
   0x5   :  { %364 = vmatprep.subr.bf16.mxu1 %v356_v3  ;;  %359 = vmatpush3.bf16.msra.mxu0 %v356_v3 }
   0x6   :  { %366 = vmatpush3.bf16.msra.mxu1 %v356_v3 }
   0x7   :  { %8 = vsyncpa [#allocation4], 0  ;;  %361 = vmatprep.subr.bf16.mxu0 %v360_v7  ;;  %365 = vmatprep.subr.bf16.mxu1 %v360_v7  ;;  %v36_v8 = vld [vmem:[%s509_s0 + $0x8] sm:$0xff]  ;;  %v37_v10 = vld [vmem:[%s509_s0 + $0x10] sm:$0xff] }
   0x8   :  { %v40_v9 = vld [vmem:[%s509_s0 + $0x28] sm:$0xff]  ;;  %v41_v11 = vld [vmem:[%s509_s0 + $0x30] sm:$0xff]  ;;  %v38_v12 = vld [vmem:[%s509_s0 + $0x18] sm:$0xff] }
   0x9   :  { %363 = vmatpush3.bf16.msra.mxu0 %v360_v7  ;;  %v42_v13 = vld [vmem:[%s509_s0 + $0x38] sm:$0xff]  ;;  %v323_v14 = vld [vmem:[%s511_s2] ss:$0 sm:$0xff]  ;;  %s427_s0 = smov [#allocation3]  }
   0xa   :  { %367 = vmatpush3.bf16.msra.mxu1 %v360_v7  ;;  %s304_s2 = sshll.u32 %s427_s0, 4  ;;  %s305_s2 = int_to_ptr.vmem [resolvable:$true] %s304_s2 }
   0xb   :  { %s403_s10 = scalar_lea.vmem %s305_s2, 1024  ;;  %p408_p1 = scmp.lt.s32.totalorder %s305_s2, %s305_s2 }
   0xc   :  { %345 = vmatmul.mubr.msk.f32.vlgmr.msra.gmra.mrb[0].mxu0 %vm47_vm0, %v36_v8  ;;  %p404_p0 = scmp.ne.s32.totalorder %s305_s2, %s403_s10  ;;  %p409_p2 = scmp.lt.s32.totalorder %s403_s10, %s403_s10 }
   0xd   :  { %351 = vmatmul.mubr.msk.f32.vlgmr.msra.gmra.mrb[0].mxu1 %vm47_vm0, %v40_v9  ;;  %347 = vmatprep.mubr.msk.f32.mxu0 %vm47_vm0, %v37_v10 }
   0xe   :  { %353 = vmatprep.mubr.msk.f32.mxu1 %vm47_vm0, %v41_v11  ;;  %p410_p3 = por %p409_p2, %p408_p1 }
  0x10   :  { %348 = vmatmul.mubr.msk.f32.gmra.mrb[2].mxu0 %vm47_vm0, %v38_v12  ;;  %p411_p4 = pnand %p410_p3, %p404_p0 }
  0x11   :  { %354 = vmatmul.mubr.msk.f32.gmra.mrb[2].mxu1 %vm47_vm0, %v42_v13 }
  0xdf   :  { %v346_v15 = vpop.f32.mrb[0].mxu0 }
  0xe0   :  { %v352_v16 = vpop.f32.mrb[0].mxu1  ;;  %v212_v17 = vadd.f32 %v346_v15, %v323_v14  ;;  %v138_v19 = vpop.f32.mrb[1].mxu0 }
  0xe1   :  { %v216_v18 = vadd.f32 %v352_v16, %v323_v14  ;;  %v158_v20 = vpop.f32.mrb[1].mxu1  ;;  %v211_v23 = vadd.f32 %v323_v14, %v138_v19 }
  0xe2   :  { %221 = vmax.xlane.f32.xlu0 %v212_v17  ;;  %v215_v28 = vadd.f32 %v323_v14, %v158_v20 }
  0xe3   :  { %229 = vmax.xlane.f32.xlu1 %v216_v18  ;;  %v349_v21 = vpop.f32.mrb[2].mxu0 }
  0xe4   :  { %v355_v22 = vpop.f32.mrb[2].mxu1  ;;  %v214_v24 = vadd.f32 %v349_v21, %v323_v14  ;;  %v148_v25 = vpop.f32.mrb[3].mxu0 }
  0xe5   :  { %v168_v26 = vpop.f32.mrb[3].mxu1  ;;  %v213_v27 = vadd.f32 %v323_v14, %v148_v25  ;;  %v218_v29 = vadd.f32 %v355_v22, %v323_v14 }
  0xe6   :  { %219 = vmax.xlane.f32.xlu0 %v211_v23  ;;  %v217_v30 = vadd.f32 %v323_v14, %v168_v26 }
  0xe7   :  { %225 = vmax.xlane.f32.xlu1 %v214_v24 }
  0xea   :  { %227 = vmax.xlane.f32.xlu0 %v215_v28 }
  0xeb   :  { %223 = vmax.xlane.f32.xlu1 %v213_v27 }
  0xee   :  { %231 = vmax.xlane.f32.xlu0 %v217_v30 }
  0xef   :  { %233 = vmax.xlane.f32.xlu1 %v218_v29 }
 0x16f   :  { %v222_v32 = vpop.xlane.xlu0 %221 }
 0x170   :  { %v230_v31 = vpop.xlane.xlu1 %229  ;;  %v236_v33 = vsub.f32 %v212_v17, %v222_v32 }
 0x171   :  { %v240_v34 = vsub.f32 %v216_v18, %v230_v31 }
 0x172   :  { %v245_v35 = vmul.f32 1.442695, %v236_v33 }
 0x173   :  { %v220_v36 = vpop.xlane.xlu0 %219  ;;  %v253_v39 = vmul.f32 1.442695, %v240_v34 }
 0x174   :  { %v226_v37 = vpop.xlane.xlu1 %225  ;;  %v235_v38 = vsub.f32 %v211_v23, %v220_v36  ;;  %371 = vpow2.f32 %v245_v35 }
 0x175   :  { %v238_v40 = vsub.f32 %v214_v24, %v226_v37 }
 0x176   :  { %v243_v41 = vmul.f32 1.442695, %v235_v38 }
 0x177   :  { %v228_v42 = vpop.xlane.xlu0 %227  ;;  %v249_v46 = vmul.f32 1.442695, %v238_v40 }
 0x178   :  { %v224_v43 = vpop.xlane.xlu1 %223  ;;  %373 = vpow2.f32 %v243_v41  ;;  %v239_v44 = vsub.f32 %v215_v28, %v228_v42 }
 0x179   :  { %v237_v45 = vsub.f32 %v213_v27, %v224_v43  ;;  %375 = vpow2.f32 %v253_v39 }
 0x17a   :  { %v251_v47 = vmul.f32 1.442695, %v239_v44 }
 0x17b   :  { %v232_v48 = vpop.xlane.xlu0 %231  ;;  %v247_v50 = vmul.f32 1.442695, %v237_v45 }
 0x17c   :  { %v234_v49 = vpop.xlane.xlu1 %233  ;;  %377 = vpow2.f32 %v251_v47  ;;  %v241_v51 = vsub.f32 %v217_v30, %v232_v48 }
 0x17d   :  { %v242_v52 = vsub.f32 %v218_v29, %v234_v49  ;;  %379 = vpow2.f32 %v249_v46 }
 0x17e   :  { %v372_v54 = vpop.eup %371  ;;  %381 = vpow2.f32 %v247_v50  ;;  %v255_v55 = vmul.f32 1.442695, %v241_v51 }
 0x17f   :  { %v257_v53 = vmul.f32 1.442695, %v242_v52  ;;  %261 = vadd.xlane.f32.xlu1 %v372_v54 }
 0x181   :  { %383 = vpow2.f32 %v257_v53 }
 0x182   :  { %v374_v56 = vpop.eup %373  ;;  %385 = vpow2.f32 %v255_v55 }
 0x183   :  { %v376_v57 = vpop.eup %375  ;;  %259 = vadd.xlane.f32.xlu0 %v374_v56 }
 0x184   :  { %269 = vadd.xlane.f32.xlu1 %v376_v57 }
 0x186   :  { %v378_v58 = vpop.eup %377 }
 0x187   :  { %v380_v59 = vpop.eup %379  ;;  %267 = vadd.xlane.f32.xlu0 %v378_v58 }
 0x188   :  { %265 = vadd.xlane.f32.xlu1 %v380_v59  ;;  %v382_v60 = vpop.eup %381 }
 0x18b   :  { %v384_v61 = vpop.eup %383  ;;  %263 = vadd.xlane.f32.xlu0 %v382_v60 }
 0x18c   :  { %273 = vadd.xlane.f32.xlu1 %v384_v61  ;;  %v386_v62 = vpop.eup %385 }
 0x18f   :  { %271 = vadd.xlane.f32.xlu0 %v386_v62 }
 0x20c   :  { %v262_v63 = vpop.xlane.xlu1 %261 }
 0x20d   :  { %387 = vrcp.f32 %v262_v63 }
 0x210   :  { %v260_v0 = vpop.xlane.xlu0 %259 }
 0x211   :  { %389 = vrcp.f32 %v260_v0  ;;  %v270_v1 = vpop.xlane.xlu1 %269 }
 0x212   :  { %391 = vrcp.f32 %v270_v1 }
 0x214   :  { %v268_v2 = vpop.xlane.xlu0 %267 }
 0x215   :  { %393 = vrcp.f32 %v268_v2  ;;  %v266_v3 = vpop.xlane.xlu1 %265 }
 0x216   :  { %395 = vrcp.f32 %v266_v3 }
 0x217   :  { %v388_v4 = vpop.eup %387 }
 0x218   :  { %v264_v5 = vpop.xlane.xlu0 %263  ;;  %v278_v6 = vmul.f32 %v388_v4, %v372_v54 }
 0x219   :  { %397 = vrcp.f32 %v264_v5  ;;  %v274_v7 = vpop.xlane.xlu1 %273 }
 0x21a   :  { %399 = vrcp.f32 %v274_v7  ;;  %292 = vst [vmem:[#allocation3 + $0x8] sm:$0xff] %v278_v6 }
 0x21b   :  { %v390_v8 = vpop.eup %389 }
 0x21c   :  { %v392_v9 = vpop.eup %391  ;;  %v276_v10 = vmul.f32 %v390_v8, %v374_v56  ;;  %v272_v11 = vpop.xlane.xlu0 %271 }
 0x21d   :  { %v286_v12 = vmul.f32 %v392_v9, %v376_v57  ;;  %401 = vrcp.f32 %v272_v11 }
 0x21e   :  { %291 = vst [vmem:[#allocation3] sm:$0xff] %v276_v10 }
 0x21f   :  { %v394_v13 = vpop.eup %393  ;;  %296 = vst [vmem:[#allocation3 + $0x28] sm:$0xff] %v286_v12 }
 0x220   :  { %v396_v14 = vpop.eup %395  ;;  %v284_v15 = vmul.f32 %v394_v13, %v378_v58 }
 0x221   :  { %v282_v16 = vmul.f32 %v396_v14, %v380_v59 }
 0x222   :  { %295 = vst [vmem:[#allocation3 + $0x20] sm:$0xff] %v284_v15 }
 0x223   :  { %v398_v17 = vpop.eup %397  ;;  %294 = vst [vmem:[#allocation3 + $0x18] sm:$0xff] %v282_v16 }
 0x224   :  { %v400_v18 = vpop.eup %399  ;;  %v280_v19 = vmul.f32 %v398_v17, %v382_v60 }
 0x225   :  { %v290_v20 = vmul.f32 %v400_v18, %v384_v61 }
 0x226   :  { %293 = vst [vmem:[#allocation3 + $0x10] sm:$0xff] %v280_v19 }
 0x227   :  { %v402_v21 = vpop.eup %401  ;;  %298 = vst [vmem:[#allocation3 + $0x38] sm:$0xff] %v290_v20 }
 0x228   :  { %v288_v22 = vmul.f32 %v402_v21, %v386_v62 }
 0x22a   :  { %297 = vst [vmem:[#allocation3 + $0x30] sm:$0xff] %v288_v22 }
 0x22b   :  { %414 = shalt.err (!%p411_p4)
}
 0x22c   :  { %s415_s13 = scalar_lea.hbm %s512_s3, 1024 }
 0x22d   :  { %p416_p5 = scmp.ne.s32.totalorder %s512_s3, %s415_s13  ;;  %p419_p6 = scmp.lt.u32.totalorder %s415_s13, %s512_s3 }
 0x22f   :  { %p421_p7 = pnand %p419_p6, %p416_p5 }
 0x231   :  { %424 = shalt.err (!%p421_p7)
}
 0x232   :  { %s428_s18 = smov 128   ;;  %s429_s19 = smov 8  }
 0x233   :  { %310 = dma.vmem_to_hbm [thread:$0]  %s305_s2, 1024, %s512_s3, [#allocation4], %s428_s18, %s428_s18, %s429_s19  }
 0x234   :  { %425 = dma.done.wait [#allocation4], 1024  }
 0x235   :  { %426 = vsyncadd [#allocation4], 4294966272 }
 0x236   :  { %314 = vsyncpa [#allocation4], 1 }

</bundles_post_ra>
